<compile_context>
chip_gen: v7x
topology: tpu7x:2x2x1
jax: 0.10.0
libtpu: 0.0.40
codegen_flags: <defaults>
</compile_context>

<pallas_src>
import functools

import jax
import jax.numpy as jnp
from jax.experimental import pallas as pl
from jax.experimental.pallas import tpu as pltpu


def _round_up(x, m):
    return (x + m - 1) // m * m


# ---------------------------------------------------------------------------
# Fused fast path: whole x resident in VMEM -> pool + MLP + apply, one kernel.
# ---------------------------------------------------------------------------
def _gca_fused_kernel(x_ref, w1_ref, b1_ref, w2_ref, b2_ref, y_ref):
    xf = x_ref[...].astype(jnp.float32)                       # [N, C]
    avg_p = jnp.mean(xf, axis=0, keepdims=True)               # [1, C]
    max_p = jnp.max(xf, axis=0, keepdims=True)                # [1, C]
    pooled = jnp.concatenate([avg_p, max_p], axis=0)          # [2, C]
    h = jnp.dot(pooled, w1_ref[...].astype(jnp.float32),
                preferred_element_type=jnp.float32) + b1_ref[...].astype(jnp.float32)
    h = jnp.maximum(h, 0.0)                                   # ReLU
    att = jnp.dot(h, w2_ref[...].astype(jnp.float32),
                  preferred_element_type=jnp.float32) + b2_ref[...].astype(jnp.float32)
    scale = jax.nn.sigmoid(att[0:1, :] + att[1:2, :])         # [1, C]
    y_ref[...] = (xf * scale).astype(y_ref.dtype)


# ---------------------------------------------------------------------------
# Tiled pass 1: streaming sum/max pooling into resident (8, C_eff) partials.
# ---------------------------------------------------------------------------
def _gca_pool_kernel(nvalid_ref, x_ref, sum_ref, max_ref, *, tile_n):
    step = pl.program_id(0)

    @pl.when(step == 0)
    def _init():
        sum_ref[...] = jnp.zeros_like(sum_ref)
        max_ref[...] = jnp.full_like(max_ref, -jnp.inf)

    n_valid = nvalid_ref[0]
    x = x_ref[...].astype(jnp.float32)                        # [TN, C_eff]
    c_eff = x.shape[-1]
    groups = tile_n // 8
    tile_start = step * tile_n
    is_ragged = (tile_start + tile_n) > n_valid

    # Full tiles: unmasked, pure-VPU accumulation into the (8, C_eff) partials.
    @pl.when(jnp.logical_not(is_ragged))
    def _full_tile():
        g = x.reshape(groups, 8, c_eff)
        sum_ref[...] += jnp.sum(g, axis=0)
        max_ref[...] = jnp.maximum(max_ref[...], jnp.max(g, axis=0))

    # Only the ragged boundary tile pays for iota + compare + selects.
    @pl.when(is_ragged)
    def _ragged_tile():
        row = tile_start + jax.lax.broadcasted_iota(jnp.int32, x.shape, 0)
        valid = row < n_valid
        gs = jnp.where(valid, x, 0.0).reshape(groups, 8, c_eff)
        gm = jnp.where(valid, x, -jnp.inf).reshape(groups, 8, c_eff)
        sum_ref[...] += jnp.sum(gs, axis=0)
        max_ref[...] = jnp.maximum(max_ref[...], jnp.max(gm, axis=0))


# ---------------------------------------------------------------------------
# Tiled pass 2: elementwise x * scale, node-tiled, megacore-parallel.
# ---------------------------------------------------------------------------
def _gca_apply_kernel(x_ref, scale_ref, y_ref):
    y_ref[...] = (x_ref[...] * scale_ref[...]).astype(y_ref.dtype)


def gca_forward(x, w1, b1, w2, b2, *, tile_n=None, use_fused=None):
    """GCALayer forward: x * sigmoid(mlp(mean(x,0)) + mlp(max(x,0)))."""
    n, c = x.shape
    if n == 0:
        raise ValueError("GCALayer requires at least one node (N > 0).")
    itemsize = jnp.dtype(x.dtype).itemsize

    # ---- fast path: whole x resident -> single fused kernel ----------------
    if use_fused is None:
        # x + f32 working copy + output, conservative for v7x's smaller VMEM.
        use_fused = n * c * (itemsize + 8) <= 12 * 1024 * 1024
    if use_fused:
        return pl.pallas_call(
            _gca_fused_kernel,
            out_shape=jax.ShapeDtypeStruct((n, c), x.dtype),
        )(x, w1, b1, w2, b2)

    # ---- tiled streaming path -----------------------------------------------
    # Lane-dense folding for narrow channel counts (e.g. C=64 -> 128 lanes).
    fold = 1
    if c < 128 and 128 % c == 0 and n % (128 // c) == 0:
        fold = 128 // c
    n_f, c_eff = n // fold, c * fold
    x_eff = x.reshape(n_f, c_eff)            # free for row-major contiguous x

    sub = max(8, 32 // itemsize)             # sublane quantum per dtype
    row_bytes = c_eff * itemsize
    if tile_n is None:
        target_bytes = 2 * 1024 * 1024       # ~2 MiB per pipeline buffer
        tn = max(sub, (target_bytes // max(row_bytes, 1)) // sub * sub)
    else:
        tn = _round_up(max(int(tile_n), sub), sub)
    tn = min(tn, _round_up(n_f, sub))
    num_tiles = pl.cdiv(n_f, tn)

    # --- pass 1: streaming pooling -> (8, C_eff) partial sum / max ----------
    n_valid = jnp.array([n_f], jnp.int32)    # scalar-prefetch (SMEM) operand
    sum8, max8 = pl.pallas_call(
        functools.partial(_gca_pool_kernel, tile_n=tn),
        out_shape=(jax.ShapeDtypeStruct((8, c_eff), jnp.float32),
                   jax.ShapeDtypeStruct((8, c_eff), jnp.float32)),
        grid_spec=pltpu.PrefetchScalarGridSpec(
            num_scalar_prefetch=1,
            grid=(num_tiles,),
            in_specs=[pl.BlockSpec((tn, c_eff), lambda i, nv: (i, 0))],
            out_specs=(pl.BlockSpec((8, c_eff), lambda i, nv: (0, 0)),
                       pl.BlockSpec((8, c_eff), lambda i, nv: (0, 0)))),
        compiler_params=pltpu.CompilerParams(
            dimension_semantics=("arbitrary",)),
    )(n_valid, x_eff)

    # --- tiny gate MLP on pooled rows (plain JAX; MXU-negligible) -----------
    f32 = jnp.float32
    sum_c = jnp.sum(sum8, axis=0, keepdims=True)              # (1, C_eff)
    max_c = jnp.max(max8, axis=0, keepdims=True)              # (1, C_eff)
    if fold > 1:
        sum_c = jnp.sum(sum_c.reshape(fold, c), axis=0, keepdims=True)
        max_c = jnp.max(max_c.reshape(fold, c), axis=0, keepdims=True)
    pooled = jnp.concatenate([sum_c / n, max_c], axis=0)      # (2, C)
    h = jnp.maximum(pooled @ w1.astype(f32) + b1.astype(f32), 0.0)
    att = h @ w2.astype(f32) + b2.astype(f32)
    scale = jax.nn.sigmoid(att[0:1, :] + att[1:2, :])         # (1, C) f32
    scale_eff = jnp.tile(scale, (1, fold)) if fold > 1 else scale

    # --- pass 2: broadcast multiply, pipelined + megacore-parallel ----------
    y_eff = pl.pallas_call(
        _gca_apply_kernel,
        out_shape=jax.ShapeDtypeStruct((n_f, c_eff), x.dtype),
        grid=(num_tiles,),
        in_specs=[pl.BlockSpec((tn, c_eff), lambda i: (i, 0)),
                  pl.BlockSpec((1, c_eff), lambda i: (0, 0))],
        out_specs=pl.BlockSpec((tn, c_eff), lambda i: (i, 0)),
        compiler_params=pltpu.CompilerParams(
            dimension_semantics=("parallel",)),
    )(x_eff, scale_eff)
    return y_eff.reshape(n, c)


if __name__ == "__main__":
    key = jax.random.PRNGKey(0)

    def make_params(k, c, reduction):
        r = max(1, c // reduction)
        ks = jax.random.split(k, 4)
        w1 = (0.1 * jax.random.normal(ks[0], (c, r))).astype(jnp.float32)
        b1 = (0.1 * jax.random.normal(ks[1], (1, r))).astype(jnp.float32)
        w2 = (0.1 * jax.random.normal(ks[2], (r, c))).astype(jnp.float32)
        b2 = (0.1 * jax.random.normal(ks[3], (1, c))).astype(jnp.float32)
        return w1, b1, w2, b2

    def reference(x, w1, b1, w2, b2):
        xf = x.astype(jnp.float32)
        mlp = lambda p: jnp.maximum(p @ w1 + b1, 0.0) @ w2 + b2
        avg_p = jnp.mean(xf, axis=0, keepdims=True)
        max_p = jnp.max(xf, axis=0, keepdims=True)
        scale = jax.nn.sigmoid(mlp(avg_p) + mlp(max_p))
        return (xf * scale).astype(x.dtype)

    # x: [num_nodes, gate_channels]; reduction_ratio = 16 -> hidden = C // 16.
    N, C, REDUCTION = 512, 64, 16
    kx, kp = jax.random.split(key)
    params = make_params(kp, C, REDUCTION)

    # 1) Default dispatch (small input -> fused single-kernel fast path).
    x = jax.random.normal(kx, (N, C), jnp.float32)
    y = jax.block_until_ready(gca_forward(x, *params))
    y_ref = reference(x, *params)
    assert y.shape == (N, C) and bool(jnp.all(jnp.isfinite(y)))
    err = float(jnp.max(jnp.abs(y - y_ref)))
    assert err < 1e-4, f"fused path max abs err {err}"

    # 2) Forced tiled streaming path: lane-dense C=64 folding + ragged tile.
    #    (small tile_n here only to exercise the multi-tile / ragged code path)
    x2 = jax.random.normal(jax.random.PRNGKey(1), (1000, C), jnp.float32)
    y2 = jax.block_until_ready(
        gca_forward(x2, *params, tile_n=256, use_fused=False))
    err2 = float(jnp.max(jnp.abs(y2 - reference(x2, *params))))
    assert y2.shape == x2.shape and err2 < 1e-4, f"tiled path max abs err {err2}"

    # 3) Forced tiled path, bf16 input, odd N (no folding) + ragged last tile.
    x3 = jax.random.normal(jax.random.PRNGKey(2), (251, C)).astype(jnp.bfloat16)
    y3 = jax.block_until_ready(
        gca_forward(x3, *params, tile_n=96, use_fused=False))
    err3 = float(jnp.max(jnp.abs(y3.astype(jnp.float32) -
                                 reference(x3, *params).astype(jnp.float32))))
    assert y3.shape == x3.shape and y3.dtype == jnp.bfloat16 and err3 < 5e-2, \
        f"bf16 tiled path max abs err {err3}"

    print("KERNEL_OK")
</pallas_src>

<mosaic_0001>
module attributes {stable_mosaic.version = 11 : i64} {
  func.func @_gca_fused_kernel(%arg0: memref<512x64xf32, #tpu.memory_space<vmem>>, %arg1: memref<64x4xf32, #tpu.memory_space<vmem>>, %arg2: memref<1x4xf32, #tpu.memory_space<vmem>>, %arg3: memref<4x64xf32, #tpu.memory_space<vmem>>, %arg4: memref<1x64xf32, #tpu.memory_space<vmem>>, %arg5: memref<512x64xf32, #tpu.memory_space<vmem>>) attributes {dimension_semantics = [], scalar_prefetch = 0 : i64, scratch_operands = 0 : i64, tpu.core_type = #tpu.core_type<tc>} {
    %c0 = arith.constant 0 : index
    %c0_0 = arith.constant 0 : index
    %0 = vector.load %arg0[%c0, %c0_0] : memref<512x64xf32, #tpu.memory_space<vmem>>, vector<512x64xf32>
    %cst = arith.constant dense<0.000000e+00> : vector<64xf32>
    %1 = vector.multi_reduction <add>, %0, %cst [0] : vector<512x64xf32> to vector<64xf32>
    %2 = vector.shape_cast %1 : vector<64xf32> to vector<1x64xf32>
    %cst_1 = arith.constant 5.120000e+02 : f32
    %3 = vector.broadcast %cst_1 : f32 to vector<1x64xf32>
    %4 = arith.divf %2, %3 : vector<1x64xf32>
    %cst_2 = arith.constant dense<0xFF800000> : vector<64xf32>
    %5 = vector.multi_reduction <maximumf>, %0, %cst_2 [0] : vector<512x64xf32> to vector<64xf32>
    %6 = vector.shape_cast %5 : vector<64xf32> to vector<1x64xf32>
    %7 = tpu.concatenate %4, %6 in 0 : vector<1x64xf32>, vector<1x64xf32> -> vector<2x64xf32>
    %c0_3 = arith.constant 0 : index
    %c0_4 = arith.constant 0 : index
    %8 = vector.load %arg1[%c0_3, %c0_4] : memref<64x4xf32, #tpu.memory_space<vmem>>, vector<64x4xf32>
    %cst_5 = arith.constant dense<0.000000e+00> : vector<2x4xf32>
    %9 = tpu.matmul %7, %8, %cst_5 {dimension_numbers = #tpu.dot_dimension_numbers<[1], [0], [0], [1], [0, 0, 1, 1], [], []>} : vector<2x64xf32>, vector<64x4xf32>, vector<2x4xf32> -> vector<2x4xf32>
    %c0_6 = arith.constant 0 : index
    %c0_7 = arith.constant 0 : index
    %10 = vector.load %arg2[%c0_6, %c0_7] : memref<1x4xf32, #tpu.memory_space<vmem>>, vector<1x4xf32>
    %11 = vector.broadcast %10 : vector<1x4xf32> to vector<2x4xf32>
    %12 = arith.addf %9, %11 : vector<2x4xf32>
    %cst_8 = arith.constant 0.000000e+00 : f32
    %13 = vector.broadcast %cst_8 : f32 to vector<2x4xf32>
    %14 = arith.maximumf %12, %13 : vector<2x4xf32>
    %c0_9 = arith.constant 0 : index
    %c0_10 = arith.constant 0 : index
    %15 = vector.load %arg3[%c0_9, %c0_10] : memref<4x64xf32, #tpu.memory_space<vmem>>, vector<4x64xf32>
    %cst_11 = arith.constant dense<0.000000e+00> : vector<2x64xf32>
    %16 = tpu.matmul %14, %15, %cst_11 {dimension_numbers = #tpu.dot_dimension_numbers<[1], [0], [0], [1], [0, 0, 1, 1], [], []>} : vector<2x4xf32>, vector<4x64xf32>, vector<2x64xf32> -> vector<2x64xf32>
    %c0_12 = arith.constant 0 : index
    %c0_13 = arith.constant 0 : index
    %17 = vector.load %arg4[%c0_12, %c0_13] : memref<1x64xf32, #tpu.memory_space<vmem>>, vector<1x64xf32>
    %18 = vector.broadcast %17 : vector<1x64xf32> to vector<2x64xf32>
    %19 = arith.addf %16, %18 : vector<2x64xf32>
    %20 = vector.extract_strided_slice %19 {offsets = [0, 0], sizes = [1, 64], strides = [1, 1]} : vector<2x64xf32> to vector<1x64xf32>
    %21 = vector.extract_strided_slice %19 {offsets = [1, 0], sizes = [1, 64], strides = [1, 1]} : vector<2x64xf32> to vector<1x64xf32>
    %22 = arith.addf %20, %21 : vector<1x64xf32>
    %23 = arith.negf %22 : vector<1x64xf32>
    %24 = math.exp %23 : vector<1x64xf32>
    %cst_14 = arith.constant 1.000000e+00 : f32
    %25 = vector.broadcast %cst_14 : f32 to vector<1x64xf32>
    %26 = arith.addf %25, %24 : vector<1x64xf32>
    %27 = arith.divf %25, %26 : vector<1x64xf32>
    %28 = vector.broadcast %27 : vector<1x64xf32> to vector<512x64xf32>
    %29 = arith.mulf %0, %28 : vector<512x64xf32>
    %c0_15 = arith.constant 0 : index
    %c0_16 = arith.constant 0 : index
    %30 = vector.load %arg5[%c0_15, %c0_16] : memref<512x64xf32, #tpu.memory_space<vmem>>, vector<512x64xf32>
    tpu.vector_store %arg5[%c0_15, %c0_16], %29 {strides = array<i32>} : memref<512x64xf32, #tpu.memory_space<vmem>>, vector<512x64xf32>,
    return
  }
}

</mosaic_0001>

<bundles_post_ra>
// kernel: tpu_custom_call.1
= control target key start
LH: loop header
LB: loop body
LE: loop exit
PB: predicated region body
PF: predicated region fallthrough
CT: control target
= control target key end

     0   :  { %v736_v0 = vmov 0.0|0.0   ;;  %vm737_vm0 = vmmov 0   ;;  %v738_v4 = vmov 0.0   ;;  %vm84_vm1 = vcmask 523264   ;;  %s1765_s1 = inlined_call_operand.vmem [shape: f32[64,4], index: 1, kind: input, shape index: {}]   ;;  %s1766_s0 = inlined_call_operand.vmem [shape: f32[512,64], index: 0, kind: input, shape index: {}]   ;;  %s1767_s3 = inlined_call_operand.vmem [shape: f32[4,64], index: 3, kind: input, shape index: {}]   ;;  %s1768_s2 = inlined_call_operand.vmem [shape: f32[1,4], index: 2, kind: input, shape index: {}]   ;;  %s1769_s4 = inlined_call_operand.vmem [shape: f32[1,64], index: 4, kind: input, shape index: {}]   ;;  %s1770_s5 = inlined_call_operand.vmem [shape: f32[512,64], index: 5, kind: output, shape index: {}]  }
   0x1   :  { %717 = vmatprep.subr.bf16.mxu0 %v736_v0  ;;  %v355_v1 = vld [vmem:[%s1765_s1] sm:$0xff]  ;;  %v356_v2 = vld [vmem:[%s1765_s1 + $0x8] sm:$0xff]  ;;  %v357_v3 = vld [vmem:[%s1765_s1 + $0x10] sm:$0xff]  ;;  %709 = vmatprep.mubr.msk.f32.mxu0 %vm737_vm0, %v738_v4  ;;  %vm353_vm2 = vcmask 1040384   ;;  %vm456_vm3 = vcmask 1043456   ;;  %vm452_vm4 = vcmask 31744  }
   0x2   :  { %v718_v5 = vpack.c.bf16 %v356_v2, %v355_v1  ;;  %v358_v6 = vld [vmem:[%s1765_s1 + $0x18] sm:$0xff]  ;;  %712 = vmatprep.subr.mxu1 %v738_v4  ;;  %714 = vmatprep.mubr.msk.f32.mxu1 %vm737_vm0, %v738_v4  ;;  %v784_v7 = vld [vmem:[%s1766_s0] sm:$0xff]  ;;  %v789_v9 = vld [vmem:[%s1766_s0 + $0x8] sm:$0xff] }
   0x3   :  { %v721_v8 = vpack.c.bf16 %v358_v6, %v357_v3  ;;  %v794_v10 = vld [vmem:[%s1766_s0 + $0x10] sm:$0xff]  ;;  %v799_v11 = vld [vmem:[%s1766_s0 + $0x18] sm:$0xff]  ;;  %v85_v12 = vsel %vm84_vm1, %v784_v7, 0.0  ;;  %v359_v13 = vld [vmem:[%s1765_s1 + $0x20] sm:$0xff]  ;;  %v86_v15 = vsel %vm84_vm1, %v789_v9, 0.0 }
   0x4   :  { %719 = vmatpush3.bf16.msra.mxu0 %v718_v5  ;;  %v360_v14 = vld [vmem:[%s1765_s1 + $0x28] sm:$0xff]  ;;  %v88_v16 = vsel %vm84_vm1, %v794_v10, 0.0  ;;  %v816_v17 = vld [vmem:[%s1766_s0 + $0x20] sm:$0xff]  ;;  %v87_v18 = vadd.f32 %v86_v15, %v85_v12  ;;  %v90_v19 = vsel %vm84_vm1, %v799_v11, 0.0  ;;  %v361_v23 = vld [vmem:[%s1765_s1 + $0x30] sm:$0xff] }
   0x5   :  { %720 = vmatprep.subr.bf16.mxu0 %v736_v0  ;;  %v724_v20 = vpack.c.bf16 %v360_v14, %v359_v13  ;;  %v823_v21 = vld [vmem:[%s1766_s0 + $0x28] sm:$0xff]  ;;  %v362_v24 = vld [vmem:[%s1765_s1 + $0x38] sm:$0xff]  ;;  %v92_v25 = vsel %vm84_vm1, %v816_v17, 0.0  ;;  %v836_v26 = vld [vmem:[%s1766_s0 + $0x30] sm:$0xff] }
   0x6   :  { %v89_v22 = vadd.f32 %v88_v16, %v87_v18  ;;  %v94_v28 = vsel %vm84_vm1, %v823_v21, 0.0  ;;  %v727_v29 = vpack.c.bf16 %v362_v24, %v361_v23  ;;  %v843_v30 = vld [vmem:[%s1766_s0 + $0x38] sm:$0xff]  ;;  %v96_v32 = vsel %vm84_vm1, %v836_v26, 0.0  ;;  %v850_v33 = vld [vmem:[%s1766_s0 + $0x40] sm:$0xff]  ;;  %v857_v36 = vld [vmem:[%s1766_s0 + $0x48] sm:$0xff] }
   0x7   :  { %v98_v35 = vsel %vm84_vm1, %v843_v30, 0.0  ;;  %v100_v38 = vsel %vm84_vm1, %v850_v33, 0.0  ;;  %v864_v39 = vld [vmem:[%s1766_s0 + $0x50] sm:$0xff]  ;;  %v102_v41 = vsel %vm84_vm1, %v857_v36, 0.0  ;;  %v871_v42 = vld [vmem:[%s1766_s0 + $0x58] sm:$0xff]  ;;  %v878_v45 = vld [vmem:[%s1766_s0 + $0x60] sm:$0xff] }
   0x8   :  { %722 = vmatpush3.bf16.msra.mxu0 %v721_v8  ;;  %v91_v27 = vadd.f32 %v90_v19, %v89_v22  ;;  %v104_v44 = vsel %vm84_vm1, %v864_v39, 0.0  ;;  %v106_v47 = vsel %vm84_vm1, %v871_v42, 0.0  ;;  %v885_v48 = vld [vmem:[%s1766_s0 + $0x68] sm:$0xff]  ;;  %v108_v50 = vsel %vm84_vm1, %v878_v45, 0.0  ;;  %v892_v51 = vld [vmem:[%s1766_s0 + $0x70] sm:$0xff]  ;;  %v899_v54 = vld [vmem:[%s1766_s0 + $0x78] sm:$0xff] }
   0x9   :  { %723 = vmatprep.subr.bf16.mxu0 %v736_v0  ;;  %v110_v53 = vsel %vm84_vm1, %v885_v48, 0.0  ;;  %v112_v56 = vsel %vm84_vm1, %v892_v51, 0.0  ;;  %v906_v57 = vld [vmem:[%s1766_s0 + $0x80] sm:$0xff]  ;;  %v114_v59 = vsel %vm84_vm1, %v899_v54, 0.0  ;;  %v913_v60 = vld [vmem:[%s1766_s0 + $0x88] sm:$0xff]  ;;  %v920_v63 = vld [vmem:[%s1766_s0 + $0x90] sm:$0xff] }
   0xa   :  { %v93_v31 = vadd.f32 %v92_v25, %v91_v27  ;;  %v116_v62 = vsel %vm84_vm1, %v906_v57, 0.0  ;;  %v118_v1 = vsel %vm84_vm1, %v913_v60, 0.0  ;;  %v927_v2 = vld [vmem:[%s1766_s0 + $0x98] sm:$0xff]  ;;  %v120_v4 = vsel %vm84_vm1, %v920_v63, 0.0  ;;  %v934_v5 = vld [vmem:[%s1766_s0 + $0xa0] sm:$0xff]  ;;  %v941_v12 = vld [vmem:[%s1766_s0 + $0xa8] sm:$0xff] }
   0xb   :  { %v122_v8 = vsel %vm84_vm1, %v927_v2, 0.0  ;;  %v124_v14 = vsel %vm84_vm1, %v934_v5, 0.0  ;;  %v948_v15 = vld [vmem:[%s1766_s0 + $0xb0] sm:$0xff]  ;;  %v126_v18 = vsel %vm84_vm1, %v941_v12, 0.0  ;;  %v955_v19 = vld [vmem:[%s1766_s0 + $0xb8] sm:$0xff]  ;;  %v960_v22 = vld [vmem:[%s1766_s0 + $0xc0] sm:$0xff] }
   0xc   :  { %725 = vmatpush3.bf16.msra.mxu0 %v724_v20  ;;  %v95_v34 = vadd.f32 %v94_v28, %v93_v31  ;;  %v128_v23 = vsel %vm84_vm1, %v948_v15, 0.0  ;;  %v130_v25 = vsel %vm84_vm1, %v955_v19, 0.0  ;;  %v969_v27 = vld [vmem:[%s1766_s0 + $0xc8] sm:$0xff]  ;;  %v220_v31 = vsel %vm84_vm1, %v784_v7, -inf }
   0xd   :  { %726 = vmatprep.subr.bf16.mxu0 %v736_v0 }
   0xe   :  { %v97_v37 = vadd.f32 %v96_v32, %v95_v34  ;;  %v978_v32 = vld [vmem:[%s1766_s0 + $0xd0] sm:$0xff]  ;;  %v221_v34 = vsel %vm84_vm1, %v789_v9, -inf }
  0x10   :  { %728 = vmatpush3.bf16.msra.mxu0 %v727_v29  ;;  %v99_v40 = vadd.f32 %v98_v35, %v97_v37  ;;  %v132_v29 = vsel %vm84_vm1, %v960_v22, 0.0  ;;  %v222_v35 = vsel %vm84_vm1, %v794_v10, -inf  ;;  %v223_v37 = vsel %vm84_vm1, %v799_v11, -inf }
  0x12   :  { %v101_v43 = vadd.f32 %v100_v38, %v99_v40  ;;  %v224_v38 = vsel %vm84_vm1, %v816_v17, -inf }
  0x14   :  { %v103_v46 = vadd.f32 %v102_v41, %v101_v43  ;;  %v226_v41 = vsel %vm84_vm1, %v823_v21, -inf  ;;  %v228_v43 = vsel %vm84_vm1, %v836_v26, -inf }
  0x16   :  { %v105_v49 = vadd.f32 %v104_v44, %v103_v46  ;;  %v230_v44 = vsel %vm84_vm1, %v843_v30, -inf  ;;  %v134_v46 = vsel %vm84_vm1, %v969_v27, 0.0 }
  0x18   :  { %v107_v52 = vadd.f32 %v106_v47, %v105_v49  ;;  %v999_v47 = vld [vmem:[%s1766_s0 + $0xd8] sm:$0xff] }
  0x1a   :  { %v109_v55 = vadd.f32 %v108_v50, %v107_v52  ;;  %v136_v50 = vsel %vm84_vm1, %v978_v32, 0.0  ;;  %v225_v52 = vmax.f32 %v220_v31, %v224_v38 }
  0x1c   :  { %v111_v58 = vadd.f32 %v110_v53, %v109_v55  ;;  %v1006_v53 = vld [vmem:[%s1766_s0 + $0xe0] sm:$0xff]  ;;  %v227_v55 = vmax.f32 %v221_v34, %v226_v41  ;;  %v1043_v34 = vld [vmem:[%s1766_s0 + $0xf8] sm:$0xff] }
  0x1d   :  { %1796 = vst [vmem:[#allocation3_spill] sm:$0xff] %v1043_v34 }
  0x1e   :  { %v113_v61 = vadd.f32 %v112_v56, %v111_v58  ;;  %v229_v56 = vmax.f32 %v222_v35, %v228_v43  ;;  %v231_v58 = vmax.f32 %v223_v37, %v230_v44 }
  0x20   :  { %v115_v0 = vadd.f32 %v114_v59, %v113_v61  ;;  %v232_v59 = vsel %vm84_vm1, %v850_v33, -inf }
  0x22   :  { %v117_v3 = vadd.f32 %v116_v62, %v115_v0  ;;  %v234_v62 = vsel %vm84_vm1, %v857_v36, -inf  ;;  %v236_v0 = vsel %vm84_vm1, %v864_v39, -inf }
  0x24   :  { %v119_v6 = vadd.f32 %v118_v1, %v117_v3  ;;  %v238_v1 = vsel %vm84_vm1, %v871_v42, -inf  ;;  %v138_v3 = vsel %vm84_vm1, %v999_v47, 0.0 }
  0x26   :  { %v121_v13 = vadd.f32 %v120_v4, %v119_v6  ;;  %v1021_v4 = vld [vmem:[%s1766_s0 + $0xe8] sm:$0xff] }
  0x27   :  { %v142_v31 = vsel %vm84_vm1, %v1021_v4, 0.0 }
  0x28   :  { %v123_v16 = vadd.f32 %v122_v8, %v121_v13  ;;  %v140_v8 = vsel %vm84_vm1, %v1006_v53, 0.0  ;;  %v233_v13 = vmax.f32 %v225_v52, %v232_v59  ;;  %v252_v52 = vsel %vm84_vm1, %v920_v63, -inf }
  0x2a   :  { %v125_v20 = vadd.f32 %v124_v14, %v123_v16  ;;  %v1028_v14 = vld [vmem:[%s1766_s0 + $0xf0] sm:$0xff]  ;;  %v235_v16 = vmax.f32 %v227_v55, %v234_v62  ;;  %v254_v55 = vsel %vm84_vm1, %v927_v2, -inf }
  0x2b   :  { %1795 = vst [vmem:[#allocation2_spill] sm:$0xff] %v1028_v14  ;;  %v144_v37 = vsel %vm84_vm1, %v1028_v14, 0.0 }
  0x2c   :  { %v127_v24 = vadd.f32 %v126_v18, %v125_v20  ;;  %v237_v18 = vmax.f32 %v229_v56, %v236_v0  ;;  %v239_v20 = vmax.f32 %v231_v58, %v238_v1  ;;  %v146_v56 = vsel %vm84_vm1, %v1043_v34, 0.0  ;;  %v1065_v58 = vld [vmem:[%s1766_s0 + $0x108] sm:$0xff]  ;;  %v1072_v0 = vld [vmem:[%s1766_s0 + $0x110] sm:$0xff] }
  0x2d   :  { %1798 = vst [vmem:[#allocation5_spill] sm:$0xff] %v1065_v58  ;;  %1799 = vst [vmem:[#allocation6_spill] sm:$0xff] %v1072_v0 }
  0x2e   :  { %v129_v28 = vadd.f32 %v128_v23, %v127_v24  ;;  %v240_v23 = vsel %vm84_vm1, %v878_v45, -inf }
  0x2f   :  { %v241_v38 = vmax.f32 %v233_v13, %v240_v23  ;;  %v150_v23 = vsel %vm84_vm1, %v1065_v58, 0.0 }
  0x30   :  { %v131_v40 = vadd.f32 %v130_v25, %v129_v28  ;;  %v242_v25 = vsel %vm84_vm1, %v885_v48, -inf  ;;  %v244_v28 = vsel %vm84_vm1, %v892_v51, -inf }
  0x31   :  { %v243_v41 = vmax.f32 %v235_v16, %v242_v25  ;;  %v245_v43 = vmax.f32 %v237_v18, %v244_v28  ;;  %v258_v16 = vsel %vm84_vm1, %v941_v12, -inf  ;;  %v260_v18 = vsel %vm84_vm1, %v948_v15, -inf }
  0x32   :  { %v133_v49 = vadd.f32 %v132_v29, %v131_v40  ;;  %v246_v29 = vsel %vm84_vm1, %v899_v54, -inf  ;;  %v1050_v40 = vld [vmem:[%s1766_s0 + $0x100] sm:$0xff]  ;;  %v152_v28 = vsel %vm84_vm1, %v1072_v0, 0.0 }
  0x33   :  { %1797 = vst [vmem:[#allocation4_spill] sm:$0xff] %v1050_v40  ;;  %v247_v44 = vmax.f32 %v239_v20, %v246_v29  ;;  %v262_v20 = vsel %vm84_vm1, %v955_v19, -inf }
  0x34   :  { %v135_v61 = vadd.f32 %v134_v46, %v133_v49  ;;  %v248_v46 = vsel %vm84_vm1, %v906_v57, -inf }
  0x35   :  { %v249_v62 = vmax.f32 %v241_v38, %v248_v46  ;;  %v268_v46 = vsel %vm84_vm1, %v978_v32, -inf }
  0x36   :  { %v137_v6 = vadd.f32 %v136_v50, %v135_v61  ;;  %v250_v50 = vsel %vm84_vm1, %v913_v60, -inf  ;;  %v148_v61 = vsel %vm84_vm1, %v1050_v40, 0.0 }
  0x37   :  { %v251_v1 = vmax.f32 %v243_v41, %v250_v50  ;;  %v264_v41 = vsel %vm84_vm1, %v960_v22, -inf }
  0x38   :  { %v139_v24 = vadd.f32 %v138_v3, %v137_v6  ;;  %v253_v3 = vmax.f32 %v245_v43, %v252_v52  ;;  %v255_v6 = vmax.f32 %v247_v44, %v254_v55  ;;  %v266_v44 = vsel %vm84_vm1, %v969_v27, -inf  ;;  %v1109_v52 = vld [vmem:[%s1766_s0 + $0x128] sm:$0xff] }
  0x39   :  { %1802 = vst [vmem:[#allocation9_spill] sm:$0xff] %v1109_v52 }
  0x3a   :  { %v141_v35 = vadd.f32 %v140_v8, %v139_v24  ;;  %v256_v8 = vsel %vm84_vm1, %v934_v5, -inf  ;;  %v1087_v24 = vld [vmem:[%s1766_s0 + $0x118] sm:$0xff]  ;;  %v263_v38 = vmax.f32 %v255_v6, %v262_v20  ;;  %v272_v6 = vsel %vm84_vm1, %v1006_v53, -inf }
  0x3b   :  { %1800 = vst [vmem:[#allocation7_spill] sm:$0xff] %v1087_v24  ;;  %v257_v29 = vmax.f32 %v249_v62, %v256_v8  ;;  %v154_v50 = vsel %vm84_vm1, %v1087_v24, 0.0  ;;  %v158_v20 = vsel %vm84_vm1, %v1109_v52, 0.0 }
  0x3c   :  { %v143_v49 = vadd.f32 %v142_v31, %v141_v35  ;;  %v1094_v31 = vld [vmem:[%s1766_s0 + $0x120] sm:$0xff]  ;;  %v259_v35 = vmax.f32 %v251_v1, %v258_v16  ;;  %v276_v16 = vsel %vm84_vm1, %v1028_v14, -inf }
  0x3d   :  { %1801 = vst [vmem:[#allocation8_spill] sm:$0xff] %v1094_v31 }
  0x3e   :  { %v145_v59 = vadd.f32 %v144_v37, %v143_v49  ;;  %v261_v37 = vmax.f32 %v253_v3, %v260_v18  ;;  %v270_v49 = vsel %vm84_vm1, %v999_v47, -inf  ;;  %v267_v62 = vmax.f32 %v259_v35, %v266_v44  ;;  %v1138_v35 = vld [vmem:[%s1766_s0 + $0x140] sm:$0xff] }
  0x3f   :  { %v271_v3 = vmax.f32 %v263_v38, %v270_v49  ;;  %v278_v18 = vsel %vm84_vm1, %v1043_v34, -inf  ;;  %1805 = vst [vmem:[#allocation12_spill] sm:$0xff] %v1138_v35  ;;  %v284_v49 = vsel %vm84_vm1, %v1072_v0, -inf }
  0x40   :  { %v147_v13 = vadd.f32 %v146_v56, %v145_v59  ;;  %v156_v56 = vsel %vm84_vm1, %v1094_v31, 0.0  ;;  %v265_v59 = vmax.f32 %v257_v29, %v264_v41  ;;  %v269_v1 = vmax.f32 %v261_v37, %v268_v46 }
  0x41   :  { %v279_v41 = vmax.f32 %v271_v3, %v278_v18  ;;  %v282_v46 = vsel %vm84_vm1, %v1065_v58, -inf  ;;  %v1160_v3 = vld [vmem:[%s1766_s0 + $0x150] sm:$0xff] }
  0x42   :  { %v149_v25 = vadd.f32 %v148_v61, %v147_v13  ;;  %v1116_v61 = vld [vmem:[%s1766_s0 + $0x130] sm:$0xff]  ;;  %v274_v13 = vsel %vm84_vm1, %v1021_v4, -inf  ;;  %v273_v29 = vmax.f32 %v265_v59, %v272_v6  ;;  %v277_v38 = vmax.f32 %v269_v1, %v276_v16  ;;  %1807 = vst [vmem:[#allocation14_spill] sm:$0xff] %v1160_v3 }
  0x43   :  { %1803 = vst [vmem:[#allocation10_spill] sm:$0xff] %v1116_v61  ;;  %v275_v37 = vmax.f32 %v267_v62, %v274_v13  ;;  %v164_v62 = vsel %vm84_vm1, %v1138_v35, 0.0  ;;  %v288_v16 = vsel %vm84_vm1, %v1094_v31, -inf }
  0x44   :  { %v151_v43 = vadd.f32 %v150_v23, %v149_v25  ;;  %v1131_v23 = vld [vmem:[%s1766_s0 + $0x138] sm:$0xff] }
  0x45   :  { %1804 = vst [vmem:[#allocation11_spill] sm:$0xff] %v1131_v23  ;;  %v283_v6 = vmax.f32 %v275_v37, %v282_v46  ;;  %v1175_v37 = vld [vmem:[%s1766_s0 + $0x158] sm:$0xff] }
  0x46   :  { %v153_v55 = vadd.f32 %v152_v28, %v151_v43  ;;  %v160_v28 = vsel %vm84_vm1, %v1116_v61, 0.0  ;;  %v280_v43 = vsel %vm84_vm1, %v1050_v40, -inf  ;;  %1808 = vst [vmem:[#allocation15_spill] sm:$0xff] %v1175_v37 }
  0x47   :  { %v281_v1 = vmax.f32 %v273_v29, %v280_v43  ;;  %v1182_v43 = vld [vmem:[%s1766_s0 + $0x160] sm:$0xff] }
  0x48   :  { %v155_v8 = vadd.f32 %v154_v50, %v153_v55  ;;  %v286_v50 = vsel %vm84_vm1, %v1087_v24, -inf  ;;  %v162_v55 = vsel %vm84_vm1, %v1131_v23, 0.0  ;;  %1809 = vst [vmem:[#allocation16_spill] sm:$0xff] %v1182_v43 }
  0x49   :  { %v287_v13 = vmax.f32 %v279_v41, %v286_v50  ;;  %v168_v41 = vsel %vm84_vm1, %v1160_v3, 0.0 }
  0x4a   :  { %v157_v25 = vadd.f32 %v156_v56, %v155_v8  ;;  %v1153_v56 = vld [vmem:[%s1766_s0 + $0x148] sm:$0xff]  ;;  %v285_v8 = vmax.f32 %v277_v38, %v284_v49 }
  0x4b   :  { %1806 = vst [vmem:[#allocation13_spill] sm:$0xff] %v1153_v56  ;;  %v166_v29 = vsel %vm84_vm1, %v1153_v56, 0.0 }
  0x4c   :  { %v159_v44 = vadd.f32 %v158_v20, %v157_v25  ;;  %v290_v20 = vsel %vm84_vm1, %v1109_v52, -inf  ;;  %v292_v25 = vsel %vm84_vm1, %v1116_v61, -inf  ;;  %v302_v61 = vsel %vm84_vm1, %v1175_v37, -inf  ;;  %v1339_v52 = vld [vmem:[%s1766_s0 + $0x1e8] sm:$0xff] }
  0x4d   :  { %v291_v46 = vmax.f32 %v283_v6, %v290_v20  ;;  %v293_v49 = vmax.f32 %v285_v8, %v292_v25  ;;  %v172_v8 = vsel %vm84_vm1, %v1182_v43, 0.0 }
  0x4e   :  { %v161_v59 = vadd.f32 %v160_v28, %v159_v44  ;;  %v294_v28 = vsel %vm84_vm1, %v1131_v23, -inf  ;;  %v289_v44 = vmax.f32 %v281_v1, %v288_v16  ;;  %v298_v23 = vsel %vm84_vm1, %v1153_v56, -inf  ;;  %v1197_v1 = vld [vmem:[%s1766_s0 + $0x168] sm:$0xff] }
  0x4f   :  { %v295_v50 = vmax.f32 %v287_v13, %v294_v28  ;;  %1810 = vst [vmem:[#allocation17_spill] sm:$0xff] %v1197_v1  ;;  %v1204_v13 = vld [vmem:[%s1766_s0 + $0x170] sm:$0xff]  ;;  %v299_v20 = vmax.f32 %v291_v46, %v298_v23  ;;  %v304_v28 = vsel %vm84_vm1, %v1182_v43, -inf  ;;  %v174_v23 = vsel %vm84_vm1, %v1197_v1, 0.0 }
  0x50   :  { %v163_v18 = vadd.f32 %v162_v55, %v161_v59  ;;  %v296_v59 = vsel %vm84_vm1, %v1138_v35, -inf  ;;  %1811 = vst [vmem:[#allocation18_spill] sm:$0xff] %v1204_v13  ;;  %v1288_v35 = vld [vmem:[%s1766_s0 + $0x1c0] sm:$0xff] }
  0x51   :  { %v297_v16 = vmax.f32 %v289_v44, %v296_v59 }
  0x52   :  { %v165_v38 = vadd.f32 %v164_v62, %v163_v18  ;;  %v300_v62 = vsel %vm84_vm1, %v1160_v3, -inf  ;;  %v170_v18 = vsel %vm84_vm1, %v1175_v37, 0.0  ;;  %v308_v37 = vsel %vm84_vm1, %v1204_v13, -inf }
  0x53   :  { %v301_v25 = vmax.f32 %v293_v49, %v300_v62  ;;  %v1224_v49 = vld [vmem:[%s1766_s0 + $0x180] sm:$0xff]  ;;  %v305_v59 = vmax.f32 %v297_v16, %v304_v28 }
  0x54   :  { %v167_v55 = vadd.f32 %v166_v29, %v165_v38  ;;  %v1211_v29 = vld [vmem:[%s1766_s0 + $0x178] sm:$0xff]  ;;  %1813 = vst [vmem:[#allocation20_spill] sm:$0xff] %v1224_v49  ;;  %v312_v43 = vsel %vm84_vm1, %v1224_v49, -inf  ;;  %v1256_v28 = vld [vmem:[%s1766_s0 + $0x1a0] sm:$0xff] }
  0x55   :  { %1812 = vst [vmem:[#allocation19_spill] sm:$0xff] %v1211_v29  ;;  %v310_v44 = vsel %vm84_vm1, %v1211_v29, -inf  ;;  %1817 = vst [vmem:[#allocation24_spill] sm:$0xff] %v1256_v28 }
  0x56   :  { %v169_v6 = vadd.f32 %v168_v41, %v167_v55  ;;  %v303_v41 = vmax.f32 %v295_v50, %v302_v61  ;;  %v306_v55 = vsel %vm84_vm1, %v1197_v1, -inf  ;;  %v1229_v61 = vld [vmem:[%s1766_s0 + $0x188] sm:$0xff]  ;;  %v176_v50 = vsel %vm84_vm1, %v1204_v13, 0.0  ;;  %v1270_v13 = vld [vmem:[%s1766_s0 + $0x1b0] sm:$0xff] }
  0x57   :  { %1814 = vst [vmem:[#allocation21_spill] sm:$0xff] %v1229_v61  ;;  %v307_v62 = vmax.f32 %v299_v20, %v306_v55  ;;  %v314_v16 = vsel %vm84_vm1, %v1229_v61, -inf  ;;  %v1261_v55 = vld [vmem:[%s1766_s0 + $0x1a8] sm:$0xff] }
  0x58   :  { %v171_v38 = vadd.f32 %v170_v18, %v169_v6  ;;  %v309_v18 = vmax.f32 %v301_v25, %v308_v37  ;;  %v1236_v6 = vld [vmem:[%s1766_s0 + $0x190] sm:$0xff]  ;;  %v311_v1 = vmax.f32 %v303_v41, %v310_v44  ;;  %v178_v37 = vsel %vm84_vm1, %v1211_v29, 0.0  ;;  %1818 = vst [vmem:[#allocation25_spill] sm:$0xff] %v1261_v55 }
  0x59   :  { %1815 = vst [vmem:[#allocation22_spill] sm:$0xff] %v1236_v6  ;;  %v316_v20 = vsel %vm84_vm1, %v1236_v6, -inf  ;;  %v313_v44 = vmax.f32 %v305_v59, %v312_v43  ;;  %v320_v29 = vsel %vm84_vm1, %v1256_v28, -inf  ;;  %v322_v43 = vsel %vm84_vm1, %v1261_v55, -inf }
  0x5a   :  { %v173_v46 = vadd.f32 %v172_v8, %v171_v38  ;;  %v1241_v8 = vld [vmem:[%s1766_s0 + $0x198] sm:$0xff]  ;;  %v317_v3 = vmax.f32 %v309_v18, %v316_v20  ;;  %v182_v59 = vsel %vm84_vm1, %v1229_v61, 0.0  ;;  %v1295_v20 = vld [vmem:[%s1766_s0 + $0x1c8] sm:$0xff]  ;;  %v190_v40 = vsel %vm84_vm1, %v1261_v55, 0.0 }
  0x5b   :  { %1816 = vst [vmem:[#allocation23_spill] sm:$0xff] %v1241_v8  ;;  %v318_v25 = vsel %vm84_vm1, %v1241_v8, -inf  ;;  %v321_v18 = vmax.f32 %v313_v44, %v320_v29  ;;  %v328_v29 = vsel %vm84_vm1, %v1288_v35, -inf  ;;  %v186_v44 = vsel %vm84_vm1, %v1241_v8, 0.0 }
  0x5c   :  { %v175_v38 = vadd.f32 %v174_v23, %v173_v46  ;;  %v180_v23 = vsel %vm84_vm1, %v1224_v49, 0.0  ;;  %v315_v46 = vmax.f32 %v307_v62, %v314_v16  ;;  %v319_v56 = vmax.f32 %v311_v1, %v318_v25  ;;  %v1300_v25 = vld [vmem:[%s1766_s0 + $0x1d0] sm:$0xff] }
  0x5d   :  { %v324_v62 = vsel %vm84_vm1, %v1270_v13, -inf  ;;  %v184_v1 = vsel %vm84_vm1, %v1236_v6, 0.0 }
  0x5e   :  { %v177_v41 = vadd.f32 %v176_v50, %v175_v38  ;;  %v1275_v50 = vld [vmem:[%s1766_s0 + $0x1b8] sm:$0xff] }
  0x5f   :  { %v326_v16 = vsel %vm84_vm1, %v1275_v50, -inf }
  0x60   :  { %v179_v38 = vadd.f32 %v178_v37, %v177_v41  ;;  %v323_v37 = vmax.f32 %v315_v46, %v322_v43  ;;  %v1305_v41 = vld [vmem:[%s1766_s0 + $0x1d8] sm:$0xff]  ;;  %v327_v6 = vmax.f32 %v319_v56, %v326_v16  ;;  %v330_v46 = vsel %vm84_vm1, %v1295_v20, -inf  ;;  %v1325_v56 = vld [vmem:[%s1766_s0 + $0x1f0] sm:$0xff] }
  0x61   :  { %v332_v43 = vsel %vm84_vm1, %v1300_v25, -inf  ;;  %v334_v61 = vsel %vm84_vm1, %v1305_v41, -inf  ;;  %v329_v16 = vmax.f32 %v321_v18, %v328_v29  ;;  %v340_v18 = vsel %vm84_vm1, %v1325_v56, -inf }
  0x62   :  { %v181_v49 = vadd.f32 %v180_v23, %v179_v38  ;;  %v325_v38 = vmax.f32 %v317_v3, %v324_v62  ;;  %v1320_v3 = vld [vmem:[%s1766_s0 + $0x1e0] sm:$0xff]  ;;  %v188_v62 = vsel %vm84_vm1, %v1256_v28, 0.0  ;;  %v331_v24 = vmax.f32 %v323_v37, %v330_v46 }
  0x63   :  { %v336_v8 = vsel %vm84_vm1, %v1320_v3, -inf  ;;  %v335_v58 = vmax.f32 %v327_v6, %v334_v61  ;;  %v192_v28 = vsel %vm84_vm1, %v1270_v13, 0.0  ;;  %v194_v46 = vsel %vm84_vm1, %v1275_v50, 0.0 }
  0x64   :  { %v183_v23 = vadd.f32 %v182_v59, %v181_v49  ;;  %v1330_v49 = vld [vmem:[%s1766_s0 + $0x1f8] sm:$0xff]  ;;  %v333_v0 = vmax.f32 %v325_v38, %v332_v43 }
  0x66   :  { %v185_v59 = vadd.f32 %v184_v1, %v183_v23  ;;  %v338_v1 = vsel %vm84_vm1, %v1339_v52, -inf  ;;  %v342_v23 = vsel %vm84_vm1, %v1330_v49, -inf  ;;  %v341_v61 = vmax.f32 %v333_v0, %v340_v18 }
  0x67   :  { %v339_v38 = vmax.f32 %v331_v24, %v338_v1  ;;  %v343_v6 = vmax.f32 %v335_v58, %v342_v23  ;;  %v202_v58 = vsel %vm84_vm1, %v1305_v41, 0.0  ;;  %v206_v18 = vsel %vm84_vm1, %v1339_v52, 0.0 }
  0x68   :  { %v187_v31 = vadd.f32 %v186_v44, %v185_v59  ;;  %v337_v44 = vmax.f32 %v329_v16, %v336_v8  ;;  %v196_v59 = vsel %vm84_vm1, %v1288_v35, 0.0 }
  0x69   :  { %v345_v14 = vmax.f32 %v341_v61, %v343_v6 }
  0x6a   :  { %v189_v29 = vadd.f32 %v188_v62, %v187_v31  ;;  %v344_v34 = vmax.f32 %v337_v44, %v339_v38  ;;  %v198_v31 = vsel %vm84_vm1, %v1295_v20, 0.0 }
  0x6c   :  { %v191_v37 = vadd.f32 %v190_v40, %v189_v29  ;;  %v200_v40 = vsel %vm84_vm1, %v1300_v25, 0.0  ;;  %v346_v0 = vmax.f32 %v344_v34, %v345_v14  ;;  %v210_v14 = vsel %vm84_vm1, %v1330_v49, 0.0 }
  0x6e   :  { %v193_v43 = vadd.f32 %v192_v28, %v191_v37  ;;  %v204_v28 = vsel %vm84_vm1, %v1320_v3, 0.0  ;;  %v347_v1 = vrot.slane %v346_v0, 4 }
  0x70   :  { %v195_v55 = vadd.f32 %v194_v46, %v193_v43  ;;  %v348_v44 = vmax.f32 %v346_v0, %v347_v1  ;;  %v444_v0 = vld [vmem:[%s1767_s3] sm:$0xf] }
  0x71   :  { %713 = vmatpush3.msk.msra.mxu1 %vm456_vm3, %v444_v0 }
  0x72   :  { %v197_v62 = vadd.f32 %v196_v59, %v195_v55  ;;  %v208_v55 = vsel %vm84_vm1, %v1325_v56, 0.0  ;;  %v349_v38 = vrot.slane %v348_v44, 2 }
  0x74   :  { %v199_v24 = vadd.f32 %v198_v31, %v197_v62  ;;  %v350_v46 = vmax.f32 %v348_v44, %v349_v38 }
  0x76   :  { %v201_v8 = vadd.f32 %v200_v40, %v199_v24  ;;  %v351_v31 = vrot.slane %v350_v46, 1 }
  0x78   :  { %v203_v16 = vadd.f32 %v202_v58, %v201_v8  ;;  %v352_v24 = vmax.f32 %v350_v46, %v351_v31  ;;  %v540_v46 = vlaneseq }
  0x7a   :  { %v205_v23 = vadd.f32 %v204_v28, %v203_v16  ;;  %v676_v28 = vld [vmem:[%s1768_s2] ss:$0 sm:$0xff] }
  0x7c   :  { %v207_v29 = vadd.f32 %v206_v18, %v205_v23 }
  0x7e   :  { %v209_v34 = vadd.f32 %v208_v55, %v207_v29  ;;  %v678_v55 = vld [vmem:[%s1769_s4] ss:$0 sm:$0xff] }
  0x80   :  { %v211_v37 = vadd.f32 %v210_v14, %v209_v34 }
  0x82   :  { %v212_v61 = vrot.slane %v211_v37, 4 }
  0x84   :  { %v213_v6 = vadd.f32 %v212_v61, %v211_v37 }
  0x86   :  { %v214_v43 = vrot.slane %v213_v6, 2 }
  0x88   :  { %v215_v59 = vadd.f32 %v214_v43, %v213_v6  ;;  %v541_v43 = vshrl.u32 %v540_v46, 7 }
  0x8a   :  { %v216_v62 = vrot.slane %v215_v59, 1 }
  0x8c   :  { %v217_v40 = vadd.f32 %v216_v62, %v215_v59  ;;  %v542_v59 = vsub.s32 0, %v541_v43  ;;  %v1829_v43 = vld [vmem:[#allocation12_spill] sm:$0xff] }
  0x8e   :  { %v219_v58 = vmul.f32 0.001953125, %v217_v40 }
  0x90   :  { %v354_v8 = vsel %vm353_vm2, %v219_v58, %v352_v24 }
  0x91   :  { %710 = vmatmul.mubr.msk.f32.vlgmr.msra.gmra.mrb[0].mxu0 %vm84_vm1, %v354_v8 }
 0x164   :  { %v439_v16 = vpop.f32.mrb[0].mxu0 }
 0x165   :  { %v440_v1 = vadd.f32 %v676_v28, %v439_v16  ;;  %v711_v18 = vpop.f32.mrb[1].mxu0 }
 0x166   :  { %v1823_v18 = vld [vmem:[#allocation6_spill] sm:$0xff] }
 0x167   :  { %v443_v23 = vmax.f32 %v440_v1, 0.0 }
 0x169   :  { %715 = vmatmul.mubr.msk.f32.vlgmr.msra.gmra.mrb[0].mxu1 %vm452_vm4, %v443_v23 }
 0x23c   :  { %v526_v29 = vpop.f32.mrb[0].mxu1 }
 0x23d   :  { %v527_v44 = vadd.f32 %v678_v55, %v526_v29  ;;  %v716_v14 = vpop.f32.mrb[1].mxu1  ;;  %v1824_v55 = vld [vmem:[#allocation7_spill] sm:$0xff] }
 0x23f   :  { %v531_v34 = vrot.slane %v527_v44, 1 }
 0x241   :  { %v533_v37 = vadd.f32 %v531_v34, %v527_v44  ;;  %v1825_v44 = vld [vmem:[#allocation8_spill] sm:$0xff]  ;;  %v1826_v34 = vld [vmem:[#allocation9_spill] sm:$0xff] }
 0x243   :  { %v681_v38 = vmul.f32 -1.442695, %v533_v37 }
 0x245   :  { %732 = vpow2.f32 %v681_v38  ;;  %v1827_v38 = vld [vmem:[#allocation10_spill] sm:$0xff] }
 0x24f   :  { %v733_v61 = vpop.eup %732 }
 0x250   :  { %v537_v6 = vadd.f32 1.0, %v733_v61 }
 0x252   :  { %734 = vrcp.f32 %v537_v6  ;;  %v1828_v6 = vld [vmem:[#allocation11_spill] sm:$0xff] }
 0x25c   :  { %v735_v31 = vpop.eup %734 }
 0x25d   :  { %v1379_v62 = vrot.slane %v735_v31, %v542_v59  ;;  %v1830_v31 = vld [vmem:[#allocation13_spill] sm:$0xff] }
 0x25f   :  { %v544_v40 = vmul.f32 %v1379_v62, %v784_v7  ;;  %v545_v24 = vmul.f32 %v1379_v62, %v789_v9  ;;  %v546_v58 = vmul.f32 %v1379_v62, %v794_v10  ;;  %v547_v8 = vmul.f32 %v1379_v62, %v799_v11 }
 0x260   :  { %v548_v0 = vmul.f32 %v1379_v62, %v816_v17  ;;  %v549_v28 = vmul.f32 %v1379_v62, %v823_v21  ;;  %v550_v16 = vmul.f32 %v1379_v62, %v836_v26  ;;  %v551_v7 = vmul.f32 %v1379_v62, %v843_v30 }
 0x261   :  { %v552_v9 = vmul.f32 %v1379_v62, %v850_v33  ;;  %v553_v10 = vmul.f32 %v1379_v62, %v857_v36  ;;  %v554_v11 = vmul.f32 %v1379_v62, %v864_v39  ;;  %v555_v17 = vmul.f32 %v1379_v62, %v871_v42  ;;  %608 = vst.msk [vmem:[%s1770_s5] sm:$0xff] %vm84_vm1, %v544_v40 }
 0x262   :  { %609 = vst.msk [vmem:[%s1770_s5 + $0x8] sm:$0xff] %vm84_vm1, %v545_v24  ;;  %610 = vst.msk [vmem:[%s1770_s5 + $0x10] sm:$0xff] %vm84_vm1, %v546_v58  ;;  %v556_v21 = vmul.f32 %v1379_v62, %v878_v45  ;;  %v557_v26 = vmul.f32 %v1379_v62, %v885_v48  ;;  %v558_v30 = vmul.f32 %v1379_v62, %v892_v51  ;;  %v1831_v24 = vld [vmem:[#allocation14_spill] sm:$0xff] }
 0x263   :  { %611 = vst.msk [vmem:[%s1770_s5 + $0x18] sm:$0xff] %vm84_vm1, %v547_v8  ;;  %v559_v33 = vmul.f32 %v1379_v62, %v899_v54  ;;  %612 = vst.msk [vmem:[%s1770_s5 + $0x20] sm:$0xff] %vm84_vm1, %v548_v0  ;;  %v560_v36 = vmul.f32 %v1379_v62, %v906_v57  ;;  %v561_v39 = vmul.f32 %v1379_v62, %v913_v60  ;;  %v1832_v8 = vld [vmem:[#allocation15_spill] sm:$0xff] }
 0x264   :  { %613 = vst.msk [vmem:[%s1770_s5 + $0x28] sm:$0xff] %vm84_vm1, %v549_v28  ;;  %614 = vst.msk [vmem:[%s1770_s5 + $0x30] sm:$0xff] %vm84_vm1, %v550_v16  ;;  %v562_v42 = vmul.f32 %v1379_v62, %v920_v63  ;;  %v563_v45 = vmul.f32 %v1379_v62, %v927_v2  ;;  %v564_v48 = vmul.f32 %v1379_v62, %v934_v5  ;;  %v1833_v28 = vld [vmem:[#allocation16_spill] sm:$0xff] }
 0x265   :  { %615 = vst.msk [vmem:[%s1770_s5 + $0x38] sm:$0xff] %vm84_vm1, %v551_v7  ;;  %616 = vst.msk [vmem:[%s1770_s5 + $0x40] sm:$0xff] %vm84_vm1, %v552_v9  ;;  %v565_v51 = vmul.f32 %v1379_v62, %v941_v12  ;;  %v566_v54 = vmul.f32 %v1379_v62, %v948_v15  ;;  %v567_v57 = vmul.f32 %v1379_v62, %v955_v19  ;;  %v1819_v19 = vld [vmem:[#allocation2_spill] sm:$0xff]  ;;  %v1834_v7 = vld [vmem:[#allocation17_spill] sm:$0xff] }
 0x266   :  { %617 = vst.msk [vmem:[%s1770_s5 + $0x48] sm:$0xff] %vm84_vm1, %v553_v10  ;;  %618 = vst.msk [vmem:[%s1770_s5 + $0x50] sm:$0xff] %vm84_vm1, %v554_v11  ;;  %v568_v60 = vmul.f32 %v1379_v62, %v960_v22  ;;  %v569_v63 = vmul.f32 %v1379_v62, %v969_v27  ;;  %v570_v2 = vmul.f32 %v1379_v62, %v978_v32  ;;  %v1820_v27 = vld [vmem:[#allocation3_spill] sm:$0xff]  ;;  %v1835_v10 = vld [vmem:[#allocation18_spill] sm:$0xff] }
 0x267   :  { %619 = vst.msk [vmem:[%s1770_s5 + $0x58] sm:$0xff] %vm84_vm1, %v555_v17  ;;  %620 = vst.msk [vmem:[%s1770_s5 + $0x60] sm:$0xff] %vm84_vm1, %v556_v21  ;;  %v571_v5 = vmul.f32 %v1379_v62, %v999_v47  ;;  %v572_v12 = vmul.f32 %v1379_v62, %v1006_v53  ;;  %v573_v15 = vmul.f32 %v1379_v62, %v1021_v4  ;;  %v1821_v47 = vld [vmem:[#allocation4_spill] sm:$0xff]  ;;  %v1822_v4 = vld [vmem:[#allocation5_spill] sm:$0xff] }
 0x268   :  { %621 = vst.msk [vmem:[%s1770_s5 + $0x68] sm:$0xff] %vm84_vm1, %v557_v26  ;;  %622 = vst.msk [vmem:[%s1770_s5 + $0x70] sm:$0xff] %vm84_vm1, %v558_v30  ;;  %v574_v22 = vmul.f32 %v1379_v62, %v1819_v19  ;;  %v575_v32 = vmul.f32 %v1379_v62, %v1820_v27  ;;  %v576_v53 = vmul.f32 %v1379_v62, %v1821_v47  ;;  %v1836_v17 = vld [vmem:[#allocation19_spill] sm:$0xff]  ;;  %v1837_v26 = vld [vmem:[#allocation20_spill] sm:$0xff] }
 0x269   :  { %623 = vst.msk [vmem:[%s1770_s5 + $0x78] sm:$0xff] %vm84_vm1, %v559_v33  ;;  %624 = vst.msk [vmem:[%s1770_s5 + $0x80] sm:$0xff] %vm84_vm1, %v560_v36  ;;  %v577_v1 = vmul.f32 %v1379_v62, %v1822_v4  ;;  %v578_v23 = vmul.f32 %v1379_v62, %v1823_v18  ;;  %v579_v29 = vmul.f32 %v1379_v62, %v1824_v55  ;;  %v1838_v33 = vld [vmem:[#allocation21_spill] sm:$0xff] }
 0x26a   :  { %625 = vst.msk [vmem:[%s1770_s5 + $0x88] sm:$0xff] %vm84_vm1, %v561_v39  ;;  %626 = vst.msk [vmem:[%s1770_s5 + $0x90] sm:$0xff] %vm84_vm1, %v562_v42  ;;  %v580_v14 = vmul.f32 %v1379_v62, %v1825_v44  ;;  %v581_v37 = vmul.f32 %v1379_v62, %v1826_v34  ;;  %v582_v61 = vmul.f32 %v1379_v62, %v1827_v38  ;;  %v1839_v39 = vld [vmem:[#allocation22_spill] sm:$0xff] }
 0x26b   :  { %627 = vst.msk [vmem:[%s1770_s5 + $0x98] sm:$0xff] %vm84_vm1, %v563_v45  ;;  %628 = vst.msk [vmem:[%s1770_s5 + $0xa0] sm:$0xff] %vm84_vm1, %v564_v48  ;;  %v583_v46 = vmul.f32 %v1379_v62, %v1828_v6  ;;  %v584_v59 = vmul.f32 %v1379_v62, %v1829_v43  ;;  %v585_v40 = vmul.f32 %v1379_v62, %v1830_v31  ;;  %v1840_v45 = vld [vmem:[#allocation23_spill] sm:$0xff] }
 0x26c   :  { %629 = vst.msk [vmem:[%s1770_s5 + $0xa8] sm:$0xff] %vm84_vm1, %v565_v51  ;;  %630 = vst.msk [vmem:[%s1770_s5 + $0xb0] sm:$0xff] %vm84_vm1, %v566_v54  ;;  %v586_v58 = vmul.f32 %v1379_v62, %v1831_v24  ;;  %v587_v0 = vmul.f32 %v1379_v62, %v1832_v8  ;;  %v588_v16 = vmul.f32 %v1379_v62, %v1833_v28  ;;  %v1841_v51 = vld [vmem:[#allocation24_spill] sm:$0xff] }
 0x26d   :  { %631 = vst.msk [vmem:[%s1770_s5 + $0xb8] sm:$0xff] %vm84_vm1, %v567_v57  ;;  %632 = vst.msk [vmem:[%s1770_s5 + $0xc0] sm:$0xff] %vm84_vm1, %v568_v60  ;;  %v589_v9 = vmul.f32 %v1379_v62, %v1834_v7  ;;  %v590_v11 = vmul.f32 %v1379_v62, %v1835_v10  ;;  %v591_v21 = vmul.f32 %v1379_v62, %v1836_v17  ;;  %v1842_v57 = vld [vmem:[#allocation25_spill] sm:$0xff] }
 0x26e   :  { %633 = vst.msk [vmem:[%s1770_s5 + $0xc8] sm:$0xff] %vm84_vm1, %v569_v63  ;;  %634 = vst.msk [vmem:[%s1770_s5 + $0xd0] sm:$0xff] %vm84_vm1, %v570_v2  ;;  %v592_v30 = vmul.f32 %v1379_v62, %v1837_v26  ;;  %v593_v36 = vmul.f32 %v1379_v62, %v1838_v33  ;;  %v594_v42 = vmul.f32 %v1379_v62, %v1839_v39 }
 0x26f   :  { %635 = vst.msk [vmem:[%s1770_s5 + $0xd8] sm:$0xff] %vm84_vm1, %v571_v5  ;;  %636 = vst.msk [vmem:[%s1770_s5 + $0xe0] sm:$0xff] %vm84_vm1, %v572_v12  ;;  %v595_v48 = vmul.f32 %v1379_v62, %v1840_v45  ;;  %v596_v54 = vmul.f32 %v1379_v62, %v1841_v51  ;;  %v597_v60 = vmul.f32 %v1379_v62, %v1842_v57 }
 0x270   :  { %637 = vst.msk [vmem:[%s1770_s5 + $0xe8] sm:$0xff] %vm84_vm1, %v573_v15  ;;  %638 = vst.msk [vmem:[%s1770_s5 + $0xf0] sm:$0xff] %vm84_vm1, %v574_v22  ;;  %v598_v63 = vmul.f32 %v1379_v62, %v1270_v13  ;;  %v599_v2 = vmul.f32 %v1379_v62, %v1275_v50  ;;  %v600_v13 = vmul.f32 %v1379_v62, %v1288_v35 }
 0x271   :  { %639 = vst.msk [vmem:[%s1770_s5 + $0xf8] sm:$0xff] %vm84_vm1, %v575_v32  ;;  %640 = vst.msk [vmem:[%s1770_s5 + $0x100] sm:$0xff] %vm84_vm1, %v576_v53  ;;  %v601_v50 = vmul.f32 %v1379_v62, %v1295_v20  ;;  %v602_v5 = vmul.f32 %v1379_v62, %v1300_v25  ;;  %v603_v12 = vmul.f32 %v1379_v62, %v1305_v41 }
 0x272   :  { %641 = vst.msk [vmem:[%s1770_s5 + $0x108] sm:$0xff] %vm84_vm1, %v577_v1  ;;  %642 = vst.msk [vmem:[%s1770_s5 + $0x110] sm:$0xff] %vm84_vm1, %v578_v23  ;;  %v604_v35 = vmul.f32 %v1379_v62, %v1320_v3  ;;  %v605_v20 = vmul.f32 %v1379_v62, %v1339_v52  ;;  %v606_v25 = vmul.f32 %v1379_v62, %v1325_v56 }
 0x273   :  { %643 = vst.msk [vmem:[%s1770_s5 + $0x118] sm:$0xff] %vm84_vm1, %v579_v29  ;;  %644 = vst.msk [vmem:[%s1770_s5 + $0x120] sm:$0xff] %vm84_vm1, %v580_v14  ;;  %v607_v41 = vmul.f32 %v1379_v62, %v1330_v49 }
 0x274   :  { %645 = vst.msk [vmem:[%s1770_s5 + $0x128] sm:$0xff] %vm84_vm1, %v581_v37  ;;  %646 = vst.msk [vmem:[%s1770_s5 + $0x130] sm:$0xff] %vm84_vm1, %v582_v61 }
 0x275   :  { %647 = vst.msk [vmem:[%s1770_s5 + $0x138] sm:$0xff] %vm84_vm1, %v583_v46  ;;  %648 = vst.msk [vmem:[%s1770_s5 + $0x140] sm:$0xff] %vm84_vm1, %v584_v59 }
 0x276   :  { %649 = vst.msk [vmem:[%s1770_s5 + $0x148] sm:$0xff] %vm84_vm1, %v585_v40  ;;  %650 = vst.msk [vmem:[%s1770_s5 + $0x150] sm:$0xff] %vm84_vm1, %v586_v58 }
 0x277   :  { %651 = vst.msk [vmem:[%s1770_s5 + $0x158] sm:$0xff] %vm84_vm1, %v587_v0  ;;  %652 = vst.msk [vmem:[%s1770_s5 + $0x160] sm:$0xff] %vm84_vm1, %v588_v16 }
 0x278   :  { %653 = vst.msk [vmem:[%s1770_s5 + $0x168] sm:$0xff] %vm84_vm1, %v589_v9  ;;  %654 = vst.msk [vmem:[%s1770_s5 + $0x170] sm:$0xff] %vm84_vm1, %v590_v11 }
 0x279   :  { %655 = vst.msk [vmem:[%s1770_s5 + $0x178] sm:$0xff] %vm84_vm1, %v591_v21  ;;  %656 = vst.msk [vmem:[%s1770_s5 + $0x180] sm:$0xff] %vm84_vm1, %v592_v30 }
 0x27a   :  { %657 = vst.msk [vmem:[%s1770_s5 + $0x188] sm:$0xff] %vm84_vm1, %v593_v36  ;;  %658 = vst.msk [vmem:[%s1770_s5 + $0x190] sm:$0xff] %vm84_vm1, %v594_v42 }
 0x27b   :  { %659 = vst.msk [vmem:[%s1770_s5 + $0x198] sm:$0xff] %vm84_vm1, %v595_v48  ;;  %660 = vst.msk [vmem:[%s1770_s5 + $0x1a0] sm:$0xff] %vm84_vm1, %v596_v54 }
 0x27c   :  { %661 = vst.msk [vmem:[%s1770_s5 + $0x1a8] sm:$0xff] %vm84_vm1, %v597_v60  ;;  %662 = vst.msk [vmem:[%s1770_s5 + $0x1b0] sm:$0xff] %vm84_vm1, %v598_v63 }
 0x27d   :  { %663 = vst.msk [vmem:[%s1770_s5 + $0x1b8] sm:$0xff] %vm84_vm1, %v599_v2  ;;  %664 = vst.msk [vmem:[%s1770_s5 + $0x1c0] sm:$0xff] %vm84_vm1, %v600_v13 }
 0x27e   :  { %665 = vst.msk [vmem:[%s1770_s5 + $0x1c8] sm:$0xff] %vm84_vm1, %v601_v50  ;;  %666 = vst.msk [vmem:[%s1770_s5 + $0x1d0] sm:$0xff] %vm84_vm1, %v602_v5 }
 0x27f   :  { %667 = vst.msk [vmem:[%s1770_s5 + $0x1d8] sm:$0xff] %vm84_vm1, %v603_v12  ;;  %668 = vst.msk [vmem:[%s1770_s5 + $0x1e0] sm:$0xff] %vm84_vm1, %v604_v35 }
 0x280   :  { %669 = vst.msk [vmem:[%s1770_s5 + $0x1e8] sm:$0xff] %vm84_vm1, %v605_v20  ;;  %670 = vst.msk [vmem:[%s1770_s5 + $0x1f0] sm:$0xff] %vm84_vm1, %v606_v25 }
 0x281   :  { %671 = vst.msk [vmem:[%s1770_s5 + $0x1f8] sm:$0xff] %vm84_vm1, %v607_v41 }

</bundles_post_ra>
